<compile_context>
chip_gen: v6e
topology: v6e:2x2x1
jax: 0.10.0
libtpu: 0.0.40
codegen_flags: <defaults>
</compile_context>

<pallas_src>
import math

import jax
import jax.numpy as jnp
from jax.experimental import pallas as pl
from jax.experimental.pallas import tpu as pltpu


_LANE = 128
_SUBLANE = 8
# Below this the fixed kernel-launch + per-grid-step cost dominates: skip
# Pallas for the identity forward unless explicitly forced.
_SMALL_BYTES = 1 * 1024 * 1024


def _coder_identity_kernel(x_ref, o_ref):
    # Base Coder has no compute: straight copy of the VMEM-resident tile.
    # (Template body for real encode/decode subclasses.)
    o_ref[...] = x_ref[...]


def _coder_hbm_copy_kernel(x_hbm_ref, o_hbm_ref, sem):
    # Materialized copy without a VMEM round trip: one HBM->HBM DMA.
    cp = pltpu.make_async_copy(x_hbm_ref, o_hbm_ref, sem)
    cp.start()
    cp.wait()


def _target_block_bytes():
    """Generation-aware per-block byte budget for the streaming-copy slab."""
    vmem = None
    try:
        vmem = getattr(pltpu.get_tpu_info(), "vmem_capacity_bytes", None)
    except Exception:
        vmem = None
    if vmem is None:
        vmem = 64 * 1024 * 1024  # conservative (v7x-sized) default
    if vmem >= 100 * 1024 * 1024:
        return 8 * 1024 * 1024   # v5e / v6e: 128 MiB physical VMEM
    return 4 * 1024 * 1024       # v7x: 64 MiB per-TC VMEM


def _choose_2d_tiling(n_elems, itemsize, target_block_bytes):
    """Pick a lane-dense (rows, cols) reshape and a row tile.

    Returns (rows, cols, row_tile) or None if n_elems has no factor of 128
    (those shapes go through the HBM->HBM DMA path instead).
    """
    cols = None
    # Prefer layouts with rows >= 8 so vreg sublanes are filled; among those
    # take the widest cols (large, unmasked 128-lane stores).
    for need_full_sublanes in (True, False):
        for c in (8192, 4096, 2048, 1024, 512, 256, 128):
            if n_elems % c == 0 and (
                not need_full_sublanes or n_elems // c >= _SUBLANE
            ):
                cols = c
                break
        if cols is not None:
            break
    if cols is None:
        return None
    rows = n_elems // cols

    if rows <= _SUBLANE:
        # Single block covering all rows (block dim == full dim is legal).
        return rows, cols, rows

    # Largest sublane-multiple row tile within the VMEM block budget.
    max_rows = max(
        _SUBLANE,
        (target_block_bytes // (cols * itemsize)) // _SUBLANE * _SUBLANE,
    )
    # Cap at ~rows/2 (rounded up to a sublane multiple) so the grid always has
    # at least 2 steps -> "parallel" can shard across v7x's two TensorCores.
    half_rows = -(-((rows + 1) // 2) // _SUBLANE) * _SUBLANE
    row_tile = max(_SUBLANE, min(max_rows, half_rows))
    return rows, cols, row_tile


class CoderPallas:
    """JAX/Pallas analogue of the PyTorch base `Coder`."""

    def __init__(self, ec_k, ec_r, in_dim):
        # in_dim = (batch, num_channels, height, width)
        self.ec_k = ec_k
        self.ec_r = ec_r
        self.in_dim = tuple(in_dim)

    def forward(self, in_data, *, force_kernel=False, donate_input=False):
        shape = in_data.shape
        n_elems = math.prod(shape)
        itemsize = jnp.dtype(in_data.dtype).itemsize
        n_bytes = n_elems * itemsize

        # Fast path: the base-class forward does no compute, so the fastest
        # "copy" is no kernel at all.  force_kernel keeps the template
        # exercisable (tests / subclass development).
        if not force_kernel and n_bytes < _SMALL_BYTES:
            return in_data

        # Only donate (alias) the input buffer when the caller asked for it;
        # otherwise XLA would either insert a defensive copy or clobber the
        # caller's array.
        aliases = {0: 0} if donate_input else {}

        target_block_bytes = _target_block_bytes()
        tiling = _choose_2d_tiling(n_elems, itemsize, target_block_bytes)

        if tiling is not None:
            rows, cols, row_tile = tiling
            block_bytes = row_tile * cols * itemsize
            # Double-buffered in + out blocks, plus slack.
            vmem_limit = max(8 * 1024 * 1024, 4 * block_bytes + 2 * 1024 * 1024)

            x2d = in_data.reshape(rows, cols)  # free metadata reshape
            out2d = pl.pallas_call(
                _coder_identity_kernel,
                out_shape=jax.ShapeDtypeStruct((rows, cols), in_data.dtype),
                grid=(pl.cdiv(rows, row_tile),),
                in_specs=[pl.BlockSpec((row_tile, cols), lambda i: (i, 0))],
                out_specs=pl.BlockSpec((row_tile, cols), lambda i: (i, 0)),
                input_output_aliases=aliases,
                compiler_params=pltpu.CompilerParams(
                    dimension_semantics=("parallel",),
                    vmem_limit_bytes=vmem_limit,
                ),
            )(x2d)
            return out2d.reshape(shape)

        # Awkward sizes (element count not a multiple of 128): single
        # HBM->HBM DMA copy — no VMEM round trip, no lane-alignment rules.
        return pl.pallas_call(
            _coder_hbm_copy_kernel,
            out_shape=jax.ShapeDtypeStruct(shape, in_data.dtype),
            in_specs=[pl.BlockSpec(memory_space=pl.ANY)],
            out_specs=pl.BlockSpec(memory_space=pl.ANY),
            scratch_shapes=[pltpu.SemaphoreType.DMA],
            input_output_aliases=aliases,
        )(in_data)

    def __call__(self, in_data, **kwargs):
        return self.forward(in_data, **kwargs)


if __name__ == "__main__":
    # Small shapes consistent with in_dim = (batch, num_channels, height, width).
    B, C, H, W = 2, 4, 16, 16
    key = jax.random.PRNGKey(0)
    x = jax.random.normal(key, (B, C, H, W), dtype=jnp.float32)

    coder = CoderPallas(ec_k=2, ec_r=1, in_dim=(B, C, H, W))

    # 1) No-kernel fast path (default behavior for the identity forward).
    out_fast = coder(x)
    assert out_fast.shape == (B, C, H, W)

    # 2) Lane-dense streaming-copy template (force past the small-tensor
    #    shortcut so the pallas_call actually runs). No donation -> x intact.
    out = coder.forward(x, force_kernel=True)
    out = jax.block_until_ready(out)
    assert out.shape == (B, C, H, W)
    assert out.dtype == x.dtype
    assert bool(jnp.allclose(out, x))

    # 3) HBM->HBM DMA fallback (element count 3*5*7=105, not divisible by 128).
    y = jax.random.normal(jax.random.PRNGKey(1), (3, 5, 7), dtype=jnp.float32)
    out2 = coder.forward(y, force_kernel=True)
    out2 = jax.block_until_ready(out2)
    assert out2.shape == y.shape
    assert bool(jnp.allclose(out2, y))

    print("KERNEL_OK")
</pallas_src>

<mosaic_0001>
module attributes {stable_mosaic.version = 11 : i64} {
  func.func @_coder_identity_kernel(%arg0: i32, %arg1: memref<8x256xf32, #tpu.memory_space<vmem>>, %arg2: memref<8x256xf32, #tpu.memory_space<vmem>>) attributes {dimension_semantics = [#tpu.dimension_semantics<parallel>], iteration_bounds = array<i64: 1>, scalar_prefetch = 0 : i64, scratch_operands = 0 : i64, tpu.core_type = #tpu.core_type<tc>, window_params = [{transform_indices = @transform_0, window_bounds = array<i64: 8, 256>}, {transform_indices = @transform_1, window_bounds = array<i64: 8, 256>}]} {
    %c0 = arith.constant 0 : index
    %c0_0 = arith.constant 0 : index
    %0 = vector.load %arg1[%c0, %c0_0] : memref<8x256xf32, #tpu.memory_space<vmem>>, vector<8x256xf32>
    %c0_1 = arith.constant 0 : index
    %c0_2 = arith.constant 0 : index
    %1 = vector.load %arg2[%c0_1, %c0_2] : memref<8x256xf32, #tpu.memory_space<vmem>>, vector<8x256xf32>
    tpu.vector_store %arg2[%c0_1, %c0_2], %0 {strides = array<i32>} : memref<8x256xf32, #tpu.memory_space<vmem>>, vector<8x256xf32>,
    return
  }
  func.func @transform_0(%arg0: i32) -> (i32, i32) {
    %c0_i32 = arith.constant 0 : i32
    %c0_i32_0 = arith.constant 0 : i32
    return %arg0, %c0_i32 : i32, i32
  }
  func.func @transform_1(%arg0: i32) -> (i32, i32) {
    %c0_i32 = arith.constant 0 : i32
    %c0_i32_0 = arith.constant 0 : i32
    return %arg0, %c0_i32 : i32, i32
  }
}

</mosaic_0001>

<bundles_post_ra>
// kernel: tpu_custom_call.1
= control target key start
LH: loop header
LB: loop body
LE: loop exit
PB: predicated region body
PF: predicated region fallthrough
CT: control target
= control target key end

     0   :  { %6 = vsyncpa [#allocation3], 0  ;;  %s104_s0 = inlined_call_operand.hbm [shape: f32[8,256], index: 0, kind: input, shape index: {}]   ;;  %s105_s1 = inlined_call_operand.hbm [shape: f32[8,256], index: 1, kind: output, shape index: {}]  }
   0x1   :  { %7 = vsyncpa [#allocation4], 0  ;;  %s86_s6 = smov [#allocation2]  }
   0x2   :  { %s14_s7 = sshll.u32 %s86_s6, 4  ;;  %s15_s7 = int_to_ptr.vmem [resolvable:$true] %s14_s7 }
   0x3   :  { %s50_s8 = scalar_lea.vmem %s15_s7, 256  ;;  %p55_p1 = scmp.lt.s32.totalorder %s15_s7, %s15_s7 }
   0x4   :  { %p51_p0 = scmp.ne.s32.totalorder %s15_s7, %s50_s8  ;;  %p56_p2 = scmp.lt.s32.totalorder %s50_s8, %s50_s8 }
   0x6   :  { %p57_p3 = por %p56_p2, %p55_p1 }
   0x8   :  { %p58_p4 = pnand %p57_p3, %p51_p0 }
   0xa   :  { %61 = shalt.err (!%p58_p4)
}
   0xb   :  { %17 = dma.hbm_to_vmem [thread:$0]  %s104_s0, 256, %s15_s7, [#allocation3]  }
   0xc   :  { %82 = dma.done.wait [#allocation3], 256  }
   0xd   :  { %83 = vsyncadd [#allocation3], 4294967040  ;;  %s87_s11 = smov [#allocation5]   ;;  %v21_v0 = vld [vmem:[#allocation2] sm:$0xff]  ;;  %v22_v1 = vld [vmem:[#allocation2 + $0x8] sm:$0xff] }
   0xe   :  { %s31_s12 = sshll.u32 %s87_s11, 4  ;;  %23 = vst [vmem:[#allocation5] sm:$0xff] %v21_v0  ;;  %24 = vst [vmem:[#allocation5 + $0x8] sm:$0xff] %v22_v1  ;;  %s32_s12 = int_to_ptr.vmem [resolvable:$true] %s31_s12 }
   0xf   :  { %s62_s13 = scalar_lea.vmem %s32_s12, 256  ;;  %p67_p6 = scmp.lt.s32.totalorder %s32_s12, %s32_s12 }
  0x10   :  { %p63_p5 = scmp.ne.s32.totalorder %s32_s12, %s62_s13  ;;  %p68_p7 = scmp.lt.s32.totalorder %s62_s13, %s62_s13 }
  0x12   :  { %p69_p8 = por %p68_p7, %p67_p6 }
  0x14   :  { %p70_p9 = pnand %p69_p8, %p63_p5 }
  0x16   :  { %73 = shalt.err (!%p70_p9)
}
  0x17   :  { %34 = dma.vmem_to_hbm [thread:$0]  %s32_s12, 256, %s105_s1, [#allocation4]  }
  0x18   :  { %84 = dma.done.wait [#allocation4], 256  }
  0x19   :  { %85 = vsyncadd [#allocation4], 4294967040 }
  0x1a   :  { %38 = vsyncpa [#allocation3], 1 }
  0x1b   :  { %39 = vsyncpa [#allocation4], 1 }

</bundles_post_ra>
